<compile_context>
chip_gen: v7x
topology: tpu7x:2x2x1
jax: 0.10.0
libtpu: 0.0.40
codegen_flags: <defaults>
</compile_context>

<pallas_src>
import functools

import jax
import jax.numpy as jnp
from jax.experimental import pallas as pl
from jax.experimental.pallas import tpu as pltpu

LANE = 128
SUBLANE = 8
CHUNK_ROWS = 256          # per-chunk diff temp: 256 x 128 f32 = 128 KiB, trivial in VMEM


def _round_up(x: int, mult: int) -> int:
    return ((x + mult - 1) // mult) * mult


def _device_defaults():
    """(preferred tile rows, use both TensorCores) for the current TPU generation."""
    tile_rows, two_cores = 4096, False        # safe everywhere (8 MiB double-buffered f32)
    try:
        kind = jax.devices()[0].device_kind.lower()
    except Exception:
        kind = ""
    if "v7" in kind:
        # v7x: ~3.2 TB/s HBM + 2 TensorCores -> bigger tiles and a 2-way core split.
        # 8192x128 f32, 2 inputs x 2 buffers = 16 MiB, inside the 32 MiB scoped default.
        tile_rows, two_cores = 8192, True
    return tile_rows, two_cores


def _content_loss_kernel(sr_ref, hr_ref, abs_ref, sq_ref, *,
                         tile_rows: int, chunk_rows: int, blocks_per_core: int,
                         valid_rows: int, needs_mask: bool):
    """Accumulate sum(|sr-hr|) and sum((sr-hr)^2) into resident (8, 128) partials."""
    c = pl.program_id(0)          # parallel (core-split) axis
    i = pl.program_id(1)          # arbitrary (reduction) axis

    @pl.when(i == 0)
    def _init():
        abs_ref[...] = jnp.zeros_like(abs_ref)
        sq_ref[...] = jnp.zeros_like(sq_ref)

    blk = c * blocks_per_core + i            # UNclamped logical block index
    row_base = blk * tile_rows               # first logical row of this tile

    n_full = tile_rows // chunk_rows
    tail = tile_rows - n_full * chunk_rows   # multiple of SUBLANE by construction

    def partial_sums(r0, nrows, masked):
        # Cast to f32 on the VPU (keeps HBM traffic at native width).
        d = (sr_ref[pl.ds(r0, nrows), :].astype(jnp.float32)
             - hr_ref[pl.ds(r0, nrows), :].astype(jnp.float32))
        if masked:
            # Mask BEFORE abs/square so out-of-range rows contribute exactly 0.
            rows = (row_base + r0
                    + jax.lax.broadcasted_iota(jnp.int32, (nrows, LANE), 0))
            d = jnp.where(rows < valid_rows, d, 0.0)
        groups = nrows // SUBLANE
        a = jnp.abs(d).reshape(groups, SUBLANE, LANE).sum(axis=0)
        s = (d * d).reshape(groups, SUBLANE, LANE).sum(axis=0)
        return a, s

    def accumulate(masked):
        def step(k, carry):
            a_acc, s_acc = carry
            r0 = pl.multiple_of(k * chunk_rows, chunk_rows)
            a, s = partial_sums(r0, chunk_rows, masked)
            return a_acc + a, s_acc + s

        init = (jnp.zeros((SUBLANE, LANE), jnp.float32),
                jnp.zeros((SUBLANE, LANE), jnp.float32))
        if n_full:
            a_acc, s_acc = jax.lax.fori_loop(0, n_full, step, init, unroll=True)
        else:
            a_acc, s_acc = init
        if tail:
            a, s = partial_sums(n_full * chunk_rows, tail, masked)
            a_acc = a_acc + a
            s_acc = s_acc + s
        abs_ref[...] += a_acc
        sq_ref[...] += s_acc

    if needs_mask:
        # Only the block containing the row boundary (and any fully-masked padding
        # step) pays for the iota/compare/select path.
        overruns = row_base + tile_rows > valid_rows

        @pl.when(overruns)
        def _masked():
            accumulate(True)

        @pl.when(jnp.logical_not(overruns))
        def _unmasked():
            accumulate(False)
    else:
        accumulate(False)


def content_loss(sr: jax.Array, hr: jax.Array, *, tile_rows: int | None = None) -> jax.Array:
    """0.5 * mean(|sr - hr|) + 0.5 * mean((sr - hr)**2), matching torch defaults."""
    assert sr.shape == hr.shape, "sr and hr must have the same shape"
    n_elems = sr.size

    auto_rows, two_cores = _device_defaults()
    if tile_rows is None:
        tile_rows = auto_rows

    sr_flat = sr.reshape(-1)   # bitcast reshape, no HBM copy
    hr_flat = hr.reshape(-1)

    # Only a ragged tail (size % 128 != 0) is zero-padded; the zero diffs contribute 0
    # to both sums and the mean divides by the true element count.
    rem = n_elems % LANE
    if rem:
        sr_flat = jnp.pad(sr_flat, (0, LANE - rem))
        hr_flat = jnp.pad(hr_flat, (0, LANE - rem))

    m = sr_flat.size // LANE                   # rows of the lane-dense (M, 128) slab
    sr2d = sr_flat.reshape(m, LANE)
    hr2d = hr_flat.reshape(m, LANE)

    # Row granule: 8 for 32-bit, 16 for 16-bit, 32 for 8-bit packed dtypes.
    itemsize = sr.dtype.itemsize
    row_granule = SUBLANE * max(1, 4 // max(itemsize, 1))

    # Tile: as large as requested, never larger than the data (rounded to the granule).
    cap = max(row_granule, (m // row_granule) * row_granule)
    tile_rows = min(_round_up(tile_rows, row_granule), cap)

    num_blocks = pl.cdiv(m, tile_rows)
    ncores = 1
    blocks_per_core = num_blocks
    if two_cores and num_blocks >= 2:          # only split on 2-TensorCore chips (v7x)
        ncores = 2
        blocks_per_core = pl.cdiv(num_blocks, 2)
        total = ncores * blocks_per_core
        if total != num_blocks:
            # Re-balance: shrink the tile so both cores run identical block counts
            # with no wasted (clamped, re-read) padding step.
            new_tile = _round_up(pl.cdiv(m, total), row_granule)
            if (total - 1) * new_tile < m:     # every block holds >= 1 valid row
                tile_rows = new_tile
                num_blocks = total

    grid_blocks = ncores * blocks_per_core
    needs_mask = grid_blocks * tile_rows != m  # ragged last block and/or padding steps

    chunk_rows = min(CHUNK_ROWS, tile_rows)    # both multiples of row_granule

    kernel = functools.partial(
        _content_loss_kernel,
        tile_rows=tile_rows,
        chunk_rows=chunk_rows,
        blocks_per_core=blocks_per_core,
        valid_rows=m,
        needs_mask=needs_mask,
    )

    def in_map(c, i):
        # Clamp so any grid-padding step (fully masked in-kernel) still DMAs in-bounds.
        return (jnp.minimum(c * blocks_per_core + i, num_blocks - 1), 0)

    cost = pl.CostEstimate(
        flops=5 * n_elems,
        transcendentals=0,
        bytes_accessed=2 * n_elems * itemsize + 2 * ncores * SUBLANE * LANE * 4,
    )

    abs_part, sq_part = pl.pallas_call(
        kernel,
        out_shape=(
            jax.ShapeDtypeStruct((ncores * SUBLANE, LANE), jnp.float32),
            jax.ShapeDtypeStruct((ncores * SUBLANE, LANE), jnp.float32),
        ),
        grid=(ncores, blocks_per_core),
        in_specs=[
            pl.BlockSpec((tile_rows, LANE), in_map),
            pl.BlockSpec((tile_rows, LANE), in_map),
        ],
        out_specs=(
            pl.BlockSpec((SUBLANE, LANE), lambda c, i: (c, 0)),
            pl.BlockSpec((SUBLANE, LANE), lambda c, i: (c, 0)),
        ),
        compiler_params=pltpu.CompilerParams(
            dimension_semantics=("parallel", "arbitrary"),
        ),
        cost_estimate=cost,
    )(sr2d, hr2d)

    # Tiny epilogue reduce of the (ncores*8, 128) partials in plain JAX.
    inv_n = 1.0 / float(n_elems)
    return 0.5 * (jnp.sum(abs_part) + jnp.sum(sq_part)) * inv_n


if __name__ == "__main__":
    key = jax.random.PRNGKey(0)
    k_sr, k_hr = jax.random.split(key)

    # NCHW inputs like the PyTorch module would receive.
    sr = jax.random.normal(k_sr, (2, 4, 16, 16), dtype=jnp.float32)
    hr = jax.random.normal(k_hr, (2, 4, 16, 16), dtype=jnp.float32)

    loss = jax.block_until_ready(content_loss(sr, hr))

    diff = sr - hr
    ref = 0.5 * jnp.mean(jnp.abs(diff)) + 0.5 * jnp.mean(diff * diff)
    assert jnp.allclose(loss, ref, rtol=1e-5, atol=1e-6), (loss, ref)

    # Extra coverage: row-ragged mask path, lane-ragged size, multi-chunk tile, and a
    # forced multi-block reduction (small explicit tile) exercising the mask gate.
    cases = [
        ((2, 4, 24, 24), None),     # m=36 rows -> ragged last block
        ((2, 3, 17, 19), None),     # lane-ragged element count
        ((4, 16, 64, 64), None),    # m=2048 rows -> multi-chunk fori_loop inside one tile
        ((2, 4, 24, 24), 8),        # tiny tile override -> 5 blocks + masked boundary
    ]
    for idx, (shape, trows) in enumerate(cases):
        ka, kb = jax.random.split(jax.random.PRNGKey(idx + 1))
        a = jax.random.normal(ka, shape, dtype=jnp.float32)
        b = jax.random.normal(kb, shape, dtype=jnp.float32)
        got = jax.block_until_ready(content_loss(a, b, tile_rows=trows))
        dd = a - b
        want = 0.5 * jnp.mean(jnp.abs(dd)) + 0.5 * jnp.mean(dd * dd)
        assert jnp.allclose(got, want, rtol=1e-5, atol=1e-6), (shape, trows, got, want)

    print("KERNEL_OK")
</pallas_src>

<mosaic_0001>
module attributes {stable_mosaic.version = 11 : i64} {
  func.func @_content_loss_kernel(%arg0: i32, %arg1: i32, %arg2: memref<16x128xf32, #tpu.memory_space<vmem>>, %arg3: memref<16x128xf32, #tpu.memory_space<vmem>>, %arg4: memref<8x128xf32, #tpu.memory_space<vmem>>, %arg5: memref<8x128xf32, #tpu.memory_space<vmem>>) attributes {dimension_semantics = [#tpu.dimension_semantics<parallel>, #tpu.dimension_semantics<arbitrary>], iteration_bounds = array<i64: 1, 1>, scalar_prefetch = 0 : i64, scratch_operands = 0 : i64, tpu.core_type = #tpu.core_type<tc>, window_params = [{transform_indices = @transform_0, window_bounds = array<i64: 16, 128>}, {transform_indices = @transform_1, window_bounds = array<i64: 16, 128>}, {transform_indices = @transform_2, window_bounds = array<i64: 8, 128>}, {transform_indices = @transform_3, window_bounds = array<i64: 8, 128>}]} {
    %c0_i32 = arith.constant 0 : i32
    %0 = arith.cmpi eq, %arg1, %c0_i32 : i32
    %1 = arith.extui %0 : i1 to i32
    %c0_i32_0 = arith.constant 0 : i32
    %2 = arith.cmpi ne, %1, %c0_i32_0 : i32
    scf.if %2 {
      %cst_14 = arith.constant 0.000000e+00 : f32
      %26 = vector.broadcast %cst_14 : f32 to vector<8x128xf32>
      %c0_15 = arith.constant 0 : index
      %c0_16 = arith.constant 0 : index
      %27 = vector.load %arg4[%c0_15, %c0_16] : memref<8x128xf32, #tpu.memory_space<vmem>>, vector<8x128xf32>
      tpu.vector_store %arg4[%c0_15, %c0_16], %26 {strides = array<i32>} : memref<8x128xf32, #tpu.memory_space<vmem>>, vector<8x128xf32>,
      %cst_17 = arith.constant 0.000000e+00 : f32
      %28 = vector.broadcast %cst_17 : f32 to vector<8x128xf32>
      %c0_18 = arith.constant 0 : index
      %c0_19 = arith.constant 0 : index
      %29 = vector.load %arg5[%c0_18, %c0_19] : memref<8x128xf32, #tpu.memory_space<vmem>>, vector<8x128xf32>
      tpu.vector_store %arg5[%c0_18, %c0_19], %28 {strides = array<i32>} : memref<8x128xf32, #tpu.memory_space<vmem>>, vector<8x128xf32>,
    } else {
    }
    %cst = arith.constant 0.000000e+00 : f32
    %3 = vector.broadcast %cst : f32 to vector<8x128xf32>
    %cst_1 = arith.constant 0.000000e+00 : f32
    %4 = vector.broadcast %cst_1 : f32 to vector<8x128xf32>
    %c0_i32_2 = arith.constant 0 : i32
    %c16_i32 = arith.constant 16 : i32
    %5 = arith.muli %c0_i32_2, %c16_i32 : i32
    %6 = tpu.assume_multiple %5, 16 : i32
    %7 = arith.index_cast %6 : i32 to index
    %c0 = arith.constant 0 : index
    %8 = vector.load %arg2[%7, %c0] : memref<16x128xf32, #tpu.memory_space<vmem>>, vector<16x128xf32>
    %9 = arith.index_cast %6 : i32 to index
    %c0_3 = arith.constant 0 : index
    %10 = vector.load %arg3[%9, %c0_3] : memref<16x128xf32, #tpu.memory_space<vmem>>, vector<16x128xf32>
    %11 = arith.subf %8, %10 : vector<16x128xf32>
    %12 = math.absf %11 : vector<16x128xf32>
    %13 = vector.shape_cast %12 : vector<16x128xf32> to vector<2x8x128xf32>
    %cst_4 = arith.constant dense<0.000000e+00> : vector<8x128xf32>
    %14 = vector.multi_reduction <add>, %13, %cst_4 [0] : vector<2x8x128xf32> to vector<8x128xf32>
    %15 = arith.mulf %11, %11 : vector<16x128xf32>
    %16 = vector.shape_cast %15 : vector<16x128xf32> to vector<2x8x128xf32>
    %cst_5 = arith.constant dense<0.000000e+00> : vector<8x128xf32>
    %17 = vector.multi_reduction <add>, %16, %cst_5 [0] : vector<2x8x128xf32> to vector<8x128xf32>
    %18 = arith.addf %3, %14 : vector<8x128xf32>
    %19 = arith.addf %4, %17 : vector<8x128xf32>
    %c1_i32 = arith.constant 1 : i32
    %c0_6 = arith.constant 0 : index
    %c0_7 = arith.constant 0 : index
    %20 = vector.load %arg4[%c0_6, %c0_7] : memref<8x128xf32, #tpu.memory_space<vmem>>, vector<8x128xf32>
    %21 = arith.addf %20, %18 : vector<8x128xf32>
    %c0_8 = arith.constant 0 : index
    %c0_9 = arith.constant 0 : index
    %22 = vector.load %arg4[%c0_8, %c0_9] : memref<8x128xf32, #tpu.memory_space<vmem>>, vector<8x128xf32>
    tpu.vector_store %arg4[%c0_8, %c0_9], %21 {strides = array<i32>} : memref<8x128xf32, #tpu.memory_space<vmem>>, vector<8x128xf32>,
    %c0_10 = arith.constant 0 : index
    %c0_11 = arith.constant 0 : index
    %23 = vector.load %arg5[%c0_10, %c0_11] : memref<8x128xf32, #tpu.memory_space<vmem>>, vector<8x128xf32>
    %24 = arith.addf %23, %19 : vector<8x128xf32>
    %c0_12 = arith.constant 0 : index
    %c0_13 = arith.constant 0 : index
    %25 = vector.load %arg5[%c0_12, %c0_13] : memref<8x128xf32, #tpu.memory_space<vmem>>, vector<8x128xf32>
    tpu.vector_store %arg5[%c0_12, %c0_13], %24 {strides = array<i32>} : memref<8x128xf32, #tpu.memory_space<vmem>>, vector<8x128xf32>,
    return
  }
  func.func @transform_0(%arg0: i32, %arg1: i32) -> (i32, i32) {
    %c1_i32 = arith.constant 1 : i32
    %0 = arith.muli %arg0, %c1_i32 : i32
    %1 = arith.addi %0, %arg1 : i32
    %c0_i32 = arith.constant 0 : i32
    %2 = arith.minsi %1, %c0_i32 : i32
    %c0_i32_0 = arith.constant 0 : i32
    %c0_i32_1 = arith.constant 0 : i32
    return %2, %c0_i32_0 : i32, i32
  }
  func.func @transform_1(%arg0: i32, %arg1: i32) -> (i32, i32) {
    %c1_i32 = arith.constant 1 : i32
    %0 = arith.muli %arg0, %c1_i32 : i32
    %1 = arith.addi %0, %arg1 : i32
    %c0_i32 = arith.constant 0 : i32
    %2 = arith.minsi %1, %c0_i32 : i32
    %c0_i32_0 = arith.constant 0 : i32
    %c0_i32_1 = arith.constant 0 : i32
    return %2, %c0_i32_0 : i32, i32
  }
  func.func @transform_2(%arg0: i32, %arg1: i32) -> (i32, i32) {
    %c0_i32 = arith.constant 0 : i32
    %c0_i32_0 = arith.constant 0 : i32
    return %arg0, %c0_i32 : i32, i32
  }
  func.func @transform_3(%arg0: i32, %arg1: i32) -> (i32, i32) {
    %c0_i32 = arith.constant 0 : i32
    %c0_i32_0 = arith.constant 0 : i32
    return %arg0, %c0_i32 : i32, i32
  }
}

</mosaic_0001>

<bundles_post_ra>
// kernel: tpu_custom_call.1
= control target key start
LH: loop header
LB: loop body
LE: loop exit
PB: predicated region body
PF: predicated region fallthrough
CT: control target
= control target key end

     0   :  { %9 = vsyncpa [#allocation3], 0  ;;  %s300_s0 = inlined_call_operand.hbm [shape: f32[16,128], index: 0, kind: input, shape index: {}]   ;;  %s301_s1 = inlined_call_operand.hbm [shape: f32[16,128], index: 1, kind: input, shape index: {}]   ;;  %s302_s2 = inlined_call_operand.hbm [shape: f32[8,128], index: 2, kind: output, shape index: {0}]   ;;  %s303_s3 = inlined_call_operand.hbm [shape: f32[8,128], index: 3, kind: output, shape index: {1}]  }
   0x1   :  { %10 = vsyncpa [#allocation6], 0 }
   0x2   :  { %11 = vsyncpa [#allocation4], 0 }
   0x3   :  { %12 = vsyncpa [#allocation9], 0  ;;  %s226_s12 = smov [#allocation2]   ;;  %s130_s16 = scalar_lea.hbm %s300_s0, 256 }
   0x4   :  { %s24_s13 = sshll.u32 %s226_s12, 4  ;;  %p131_p0 = scmp.ne.s32.totalorder %s300_s0, %s130_s16  ;;  %s25_s13 = int_to_ptr.vmem [resolvable:$true] %s24_s13 }
   0x5   :  { %p134_p1 = scmp.lt.u32.totalorder %s130_s16, %s300_s0 }
   0x7   :  { %p136_p2 = pnand %p134_p1, %p131_p0 }
   0x9   :  { %139 = shalt.err (!%p136_p2)
}
   0xa   :  { %s140_s21 = scalar_lea.vmem %s25_s13, 256  ;;  %p145_p4 = scmp.lt.s32.totalorder %s25_s13, %s25_s13 }
   0xb   :  { %p141_p3 = scmp.ne.s32.totalorder %s25_s13, %s140_s21  ;;  %p146_p5 = scmp.lt.s32.totalorder %s140_s21, %s140_s21 }
   0xd   :  { %p147_p6 = por %p146_p5, %p145_p4 }
   0xf   :  { %p148_p7 = pnand %p147_p6, %p141_p3 }
  0x11   :  { %151 = shalt.err (!%p148_p7)
}
  0x12   :  { %s227_s22 = smov 128   ;;  %s228_s23 = smov 8  }
  0x13   :  { %30 = dma.hbm_to_vmem [thread:$0]  %s300_s0, 256, %s25_s13, [#allocation3], %s227_s22, %s227_s22, %s228_s23  }
  0x14   :  { %s229_s26 = smov [#allocation5]   ;;  %s152_s30 = scalar_lea.hbm %s301_s1, 256 }
  0x15   :  { %s42_s27 = sshll.u32 %s229_s26, 4  ;;  %p153_p8 = scmp.ne.s32.totalorder %s301_s1, %s152_s30  ;;  %s43_s27 = int_to_ptr.vmem [resolvable:$true] %s42_s27 }
  0x16   :  { %p156_p9 = scmp.lt.u32.totalorder %s152_s30, %s301_s1 }
  0x18   :  { %p158_p10 = pnand %p156_p9, %p153_p8 }
  0x1a   :  { %161 = shalt.err (!%p158_p10)
}
  0x1b   :  { %s162_s8 = scalar_lea.vmem %s43_s27, 256  ;;  %p167_p12 = scmp.lt.s32.totalorder %s43_s27, %s43_s27 }
  0x1c   :  { %p163_p11 = scmp.ne.s32.totalorder %s43_s27, %s162_s8  ;;  %p168_p13 = scmp.lt.s32.totalorder %s162_s8, %s162_s8 }
  0x1e   :  { %p169_p0 = por %p168_p13, %p167_p12 }
  0x20   :  { %p170_p1 = pnand %p169_p0, %p163_p11 }
  0x22   :  { %173 = shalt.err (!%p170_p1)
}
  0x23   :  { %48 = dma.hbm_to_vmem [thread:$0]  %s301_s1, 256, %s43_s27, [#allocation6], %s227_s22, %s227_s22, %s228_s23  }
  0x24   :  { %218 = dma.done.wait [#allocation3], 256  }
  0x25   :  { %219 = vsyncadd [#allocation3], 4294967040 }
  0x26   :  { %220 = dma.done.wait [#allocation6], 256  }
  0x27   :  { %221 = vsyncadd [#allocation6], 4294967040  ;;  %v69_v0 = vld [vmem:[#allocation2] sm:$0xff]  ;;  %v70_v1 = vld [vmem:[#allocation2 + $0x8] sm:$0xff]  ;;  %s230_s10 = smov [#allocation7]   ;;  %s231_s12 = smov [#allocation8]  }
  0x28   :  { %v71_v2 = vld [vmem:[#allocation5] sm:$0xff]  ;;  %v72_v3 = vld [vmem:[#allocation5 + $0x8] sm:$0xff]  ;;  %s95_s11 = sshll.u32 %s230_s10, 4  ;;  %s105_s1 = sshll.u32 %s231_s12, 4  ;;  %s96_s11 = int_to_ptr.vmem [resolvable:$true] %s95_s11  ;;  %s106_s1 = int_to_ptr.vmem [resolvable:$true] %s105_s1 }
  0x29   :  { %v73_v4 = vsub.f32 %v69_v0, %v71_v2  ;;  %v74_v5 = vsub.f32 %v70_v1, %v72_v3  ;;  %s174_s13 = scalar_lea.vmem %s96_s11, 128  ;;  %p179_p3 = scmp.lt.s32.totalorder %s96_s11, %s96_s11 }
  0x2a   :  { %p175_p2 = scmp.ne.s32.totalorder %s96_s11, %s174_s13  ;;  %p180_p4 = scmp.lt.s32.totalorder %s174_s13, %s174_s13 }
  0x2b   :  { %v75_v6 = vand.u32 2147483647, %v73_v4  ;;  %v78_v7 = vmul.f32 %v73_v4, %v73_v4  ;;  %v76_v8 = vand.u32 2147483647, %v74_v5  ;;  %v79_v9 = vmul.f32 %v74_v5, %v74_v5 }
  0x2c   :  { %p181_p5 = por %p180_p4, %p179_p3 }
  0x2d   :  { %v77_v10 = vadd.f32 %v76_v8, %v75_v6  ;;  %v80_v11 = vadd.f32 %v79_v9, %v78_v7 }
  0x2e   :  { %p182_p6 = pnand %p181_p5, %p175_p2 }
  0x2f   :  { %85 = vst [vmem:[#allocation7] sm:$0xff] %v77_v10  ;;  %88 = vst [vmem:[#allocation8] sm:$0xff] %v80_v11 }
  0x30   :  { %185 = shalt.err (!%p182_p6)
}
  0x31   :  { %s186_s16 = scalar_lea.hbm %s302_s2, 128 }
  0x32   :  { %p187_p7 = scmp.ne.s32.totalorder %s302_s2, %s186_s16  ;;  %p190_p8 = scmp.lt.u32.totalorder %s186_s16, %s302_s2 }
  0x34   :  { %p192_p9 = pnand %p190_p8, %p187_p7 }
  0x36   :  { %195 = shalt.err (!%p192_p9)
}
  0x37   :  { %98 = dma.vmem_to_hbm [thread:$0]  %s96_s11, 128, %s302_s2, [#allocation4]  }
  0x38   :  { %s196_s23 = scalar_lea.vmem %s106_s1, 128  ;;  %p201_p11 = scmp.lt.s32.totalorder %s106_s1, %s106_s1 }
  0x39   :  { %p197_p10 = scmp.ne.s32.totalorder %s106_s1, %s196_s23  ;;  %p202_p12 = scmp.lt.s32.totalorder %s196_s23, %s196_s23 }
  0x3b   :  { %p203_p13 = por %p202_p12, %p201_p11 }
  0x3d   :  { %p204_p0 = pnand %p203_p13, %p197_p10 }
  0x3f   :  { %207 = shalt.err (!%p204_p0)
}
  0x40   :  { %s208_s26 = scalar_lea.hbm %s303_s3, 128 }
  0x41   :  { %p209_p1 = scmp.ne.s32.totalorder %s303_s3, %s208_s26  ;;  %p212_p2 = scmp.lt.u32.totalorder %s208_s26, %s303_s3 }
  0x43   :  { %p214_p3 = pnand %p212_p2, %p209_p1 }
  0x45   :  { %217 = shalt.err (!%p214_p3)
}
  0x46   :  { %108 = dma.vmem_to_hbm [thread:$0]  %s106_s1, 128, %s303_s3, [#allocation9]  }
  0x47   :  { %222 = dma.done.wait [#allocation4], 128  }
  0x48   :  { %223 = vsyncadd [#allocation4], 4294967168 }
  0x49   :  { %224 = dma.done.wait [#allocation9], 128  }
  0x4a   :  { %225 = vsyncadd [#allocation9], 4294967168 }
  0x4b   :  { %115 = vsyncpa [#allocation3], 1 }
  0x4c   :  { %116 = vsyncpa [#allocation6], 1 }
  0x4d   :  { %117 = vsyncpa [#allocation4], 1 }
  0x4e   :  { %118 = vsyncpa [#allocation9], 1 }

</bundles_post_ra>
